<compile_context>
chip_gen: v5e
topology: v5e:2x2
jax: 0.10.0
libtpu: 0.0.40
codegen_flags: <defaults>
</compile_context>

<pallas_src>
import jax
import jax.numpy as jnp
from jax.experimental import pallas as pl
from jax.experimental.pallas import tpu as pltpu


def _sacl_row_kernel(temp_ref, mix_ref, lam_ref, lab_row_ref,
                     orig_t_ref, lab_col_ref, out_ref):
    """Per-row mean_log_prob_pos for one tile of TQ mixup rows.

    temp_ref    : SMEM (1,)    f32   temperature
    mix_ref     : VMEM (TQ, D)       mixup embeddings tile (native dtype)
    lam_ref     : VMEM (TQ, 1) f32
    lab_row_ref : VMEM (TQ, 1) i32   labels for this tile's rows
    orig_t_ref  : VMEM (D, B)        original embeddings, pre-transposed (resident)
    lab_col_ref : VMEM (1, B)  i32   labels for all columns (resident)
    out_ref     : VMEM (TQ, 1) f32   mean_log_prob_pos per row
    """
    eps = 1e-12  # matches torch.nn.functional.normalize default eps

    me = mix_ref[...].astype(jnp.float32)                        # (TQ, D)
    ot = orig_t_ref[...].astype(jnp.float32)                     # (D, B)

    # L2-normalize mixup rows, folding 1/temperature into the scale.
    me_sq = jnp.sum(me * me, axis=1, keepdims=True)              # (TQ, 1)
    me_scale = jax.lax.rsqrt(jnp.maximum(me_sq, eps * eps)) / temp_ref[0]
    me_n = me * me_scale                                         # (TQ, D)

    # L2-normalize original embeddings (columns of the transposed layout).
    ot_sq = jnp.sum(ot * ot, axis=0, keepdims=True)              # (1, B)
    ot_n = ot * jax.lax.rsqrt(jnp.maximum(ot_sq, eps * eps))     # (D, B)

    # (similarity / temperature): (TQ, D) @ (D, B) on the MXU, f32 accumulate.
    sim = jax.lax.dot_general(
        me_n, ot_n,
        dimension_numbers=(((1,), (0,)), ((), ())),
        preferred_element_type=jnp.float32)                      # (TQ, B)

    logits = sim - jnp.max(sim, axis=1, keepdims=True)           # (TQ, B)

    eq_f = (lab_row_ref[...] == lab_col_ref[...]).astype(jnp.float32)  # (TQ, B)
    neg_f = 1.0 - eq_f

    denom = jnp.sum(jnp.exp(logits) * neg_f, axis=1, keepdims=True) + 1e-6
    log_denom = jnp.log(denom)                                   # (TQ, 1)

    pos_logit_sum = jnp.sum(eq_f * logits, axis=1, keepdims=True)  # (TQ, 1)
    pos_cnt = jnp.sum(eq_f, axis=1, keepdims=True)                 # (TQ, 1)

    lam = lam_ref[...]                                           # (TQ, 1)
    # numerator   = sum_j (lam*eq) * (logits - log_denom)
    #             = lam * (sum_j eq*logits - log_denom * sum_j eq)
    numerator = lam * (pos_logit_sum - log_denom * pos_cnt)
    pos_count = lam * pos_cnt + 1e-6
    out_ref[...] = numerator / pos_count


def _round_up(x, m):
    return ((x + m - 1) // m) * m


def symmetry_aware_contrastive_loss(original_embeddings, mixup_embeddings,
                                    original_labels, lam,
                                    temperature=0.07, block_rows=None):
    """original_embeddings, mixup_embeddings: [B, D] float (any float dtype)
       original_labels: [B] int;  lam: [B] float
       returns scalar float32 loss (matches the PyTorch module)."""
    B, D = original_embeddings.shape

    # Row-tile size: one tile for small batches; 256-row tiles for large
    # batches (MXU-aligned on v6e/v7x, 2x128 on v5e).  Must be a multiple of 8.
    if block_rows is None:
        block_rows = 256
    tq = min(_round_up(B, 8), _round_up(block_rows, 8))
    b_pad = _round_up(B, tq)
    num_tiles = b_pad // tq

    labels = original_labels.astype(jnp.int32)
    lab_row = labels.reshape(B, 1)
    lab_col = labels.reshape(1, B)
    lam_col = lam.reshape(B, 1).astype(jnp.float32)
    orig_t = jnp.transpose(original_embeddings)        # (D, B), native dtype
    mix = mixup_embeddings                             # (B, D), native dtype

    if b_pad != B:
        pad = b_pad - B
        # Padded rows contribute nothing: they are sliced off in the wrapper.
        mix = jnp.pad(mix, ((0, pad), (0, 0)))
        lam_col = jnp.pad(lam_col, ((0, pad), (0, 0)))
        lab_row = jnp.pad(lab_row, ((0, pad), (0, 0)), constant_values=-1)

    temp = jnp.asarray([temperature], dtype=jnp.float32)

    per_row = pl.pallas_call(
        _sacl_row_kernel,
        out_shape=jax.ShapeDtypeStruct((b_pad, 1), jnp.float32),
        grid_spec=pltpu.PrefetchScalarGridSpec(
            num_scalar_prefetch=0,
            grid=(num_tiles,),
            in_specs=[
                pl.BlockSpec(memory_space=pltpu.MemorySpace.SMEM),  # temperature
                pl.BlockSpec((tq, D), lambda i: (i, 0)),            # mixup rows
                pl.BlockSpec((tq, 1), lambda i: (i, 0)),            # lam
                pl.BlockSpec((tq, 1), lambda i: (i, 0)),            # row labels
                pl.BlockSpec((D, B), lambda i: (0, 0)),             # orig^T (resident)
                pl.BlockSpec((1, B), lambda i: (0, 0)),             # col labels (resident)
            ],
            out_specs=pl.BlockSpec((tq, 1), lambda i: (i, 0)),
        ),
        compiler_params=pltpu.CompilerParams(
            dimension_semantics=("parallel",)),
    )(temp, mix, lam_col, lab_row, orig_t, lab_col)

    # Final mean (and padded-row slicing) happens in the wrapper so the grid
    # axis stays fully parallel across TensorCores.
    return -jnp.mean(per_row[:B, 0])


def _reference_loss(oe, me, labels, lam, temperature=0.07):
    # pure-JAX literal transcription of the PyTorch forward, for sanity check
    oe = oe / jnp.maximum(jnp.linalg.norm(oe, axis=1, keepdims=True), 1e-12)
    me = me / jnp.maximum(jnp.linalg.norm(me, axis=1, keepdims=True), 1e-12)
    sim = (me @ oe.T) / temperature
    logits = sim - jnp.max(sim, axis=1, keepdims=True)
    lab = labels.reshape(-1, 1)
    pos_mask = (lab == lab.T).astype(jnp.float32) * lam.reshape(-1, 1)
    neg_mask = (lab != lab.T).astype(jnp.float32)
    exp_logits = jnp.exp(logits) * neg_mask
    denom = jnp.sum(exp_logits, axis=1, keepdims=True) + 1e-6
    log_prob = logits - jnp.log(denom)
    numerator = jnp.sum(pos_mask * log_prob, axis=1)
    pos_count = jnp.sum(pos_mask, axis=1) + 1e-6
    return -jnp.mean(numerator / pos_count)


if __name__ == "__main__":
    key = jax.random.PRNGKey(0)
    k1, k2, k3, k4 = jax.random.split(key, 4)

    # Case 1: small single-tile case (B=8, D=32).
    B, D = 8, 32
    original_embeddings = jax.random.normal(k1, (B, D), dtype=jnp.float32)
    mixup_embeddings = jax.random.normal(k2, (B, D), dtype=jnp.float32)
    original_labels = jax.random.randint(k3, (B,), 0, 4, dtype=jnp.int32)
    lam = jax.random.uniform(k4, (B,), dtype=jnp.float32)

    loss = symmetry_aware_contrastive_loss(
        original_embeddings, mixup_embeddings, original_labels, lam,
        temperature=0.07)
    loss = jax.block_until_ready(loss)
    ref = _reference_loss(original_embeddings, mixup_embeddings,
                          original_labels, lam, temperature=0.07)
    assert jnp.allclose(loss, ref, rtol=1e-4, atol=1e-4), (loss, ref)

    # Case 2: exercise the row-tiled / padded path (B=20 rows, TQ=8 -> 3 tiles).
    k5, k6, k7, k8 = jax.random.split(jax.random.PRNGKey(1), 4)
    B2, D2 = 20, 32
    oe2 = jax.random.normal(k5, (B2, D2), dtype=jnp.float32)
    me2 = jax.random.normal(k6, (B2, D2), dtype=jnp.float32)
    lb2 = jax.random.randint(k7, (B2,), 0, 4, dtype=jnp.int32)
    lm2 = jax.random.uniform(k8, (B2,), dtype=jnp.float32)

    loss2 = symmetry_aware_contrastive_loss(oe2, me2, lb2, lm2,
                                            temperature=0.07, block_rows=8)
    loss2 = jax.block_until_ready(loss2)
    ref2 = _reference_loss(oe2, me2, lb2, lm2, temperature=0.07)
    assert jnp.allclose(loss2, ref2, rtol=1e-4, atol=1e-4), (loss2, ref2)

    print("KERNEL_OK")
</pallas_src>

<mosaic_0001>
module attributes {stable_mosaic.version = 11 : i64} {
  func.func @_sacl_row_kernel(%arg0: i32, %arg1: memref<1xf32, #tpu.memory_space<smem>>, %arg2: memref<8x32xf32, #tpu.memory_space<vmem>>, %arg3: memref<8x1xf32, #tpu.memory_space<vmem>>, %arg4: memref<8x1xi32, #tpu.memory_space<vmem>>, %arg5: memref<32x8xf32, #tpu.memory_space<vmem>>, %arg6: memref<1x8xi32, #tpu.memory_space<vmem>>, %arg7: memref<8x1xf32, #tpu.memory_space<vmem>>) attributes {dimension_semantics = [#tpu.dimension_semantics<parallel>], iteration_bounds = array<i64: 1>, scalar_prefetch = 0 : i64, scratch_operands = 0 : i64, tpu.core_type = #tpu.core_type<tc>, window_params = [{transform_indices = @transform_0, window_bounds = array<i64: 1>}, {transform_indices = @transform_1, window_bounds = array<i64: 8, 32>}, {transform_indices = @transform_2, window_bounds = array<i64: 8, 1>}, {transform_indices = @transform_3, window_bounds = array<i64: 8, 1>}, {pipeline_mode = #tpu.pipeline_mode<synchronous>, transform_indices = @transform_4, window_bounds = array<i64: 32, 8>}, {pipeline_mode = #tpu.pipeline_mode<synchronous>, transform_indices = @transform_5, window_bounds = array<i64: 1, 8>}, {transform_indices = @transform_6, window_bounds = array<i64: 8, 1>}]} {
    %c0 = arith.constant 0 : index
    %c0_0 = arith.constant 0 : index
    %0 = vector.load %arg2[%c0, %c0_0] : memref<8x32xf32, #tpu.memory_space<vmem>>, vector<8x32xf32>
    %c0_1 = arith.constant 0 : index
    %c0_2 = arith.constant 0 : index
    %1 = vector.load %arg5[%c0_1, %c0_2] : memref<32x8xf32, #tpu.memory_space<vmem>>, vector<32x8xf32>
    %2 = arith.mulf %0, %0 : vector<8x32xf32>
    %cst = arith.constant dense<0.000000e+00> : vector<8xf32>
    %3 = vector.multi_reduction <add>, %2, %cst [1] : vector<8x32xf32> to vector<8xf32>
    %4 = vector.shape_cast %3 : vector<8xf32> to vector<8x1xf32>
    %cst_3 = arith.constant 1.000000e-24 : f32
    %5 = vector.broadcast %cst_3 : f32 to vector<8x1xf32>
    %6 = arith.maximumf %4, %5 : vector<8x1xf32>
    %7 = math.rsqrt %6 : vector<8x1xf32>
    %c0_4 = arith.constant 0 : index
    %8 = memref.load %arg1[%c0_4] : memref<1xf32, #tpu.memory_space<smem>>
    %9 = vector.broadcast %8 : f32 to vector<8x1xf32>
    %10 = arith.divf %7, %9 : vector<8x1xf32>
    %11 = vector.broadcast %10 : vector<8x1xf32> to vector<8x32xf32>
    %12 = arith.mulf %0, %11 : vector<8x32xf32>
    %13 = arith.mulf %1, %1 : vector<32x8xf32>
    %cst_5 = arith.constant dense<0.000000e+00> : vector<8xf32>
    %14 = vector.multi_reduction <add>, %13, %cst_5 [0] : vector<32x8xf32> to vector<8xf32>
    %15 = vector.shape_cast %14 : vector<8xf32> to vector<1x8xf32>
    %cst_6 = arith.constant 1.000000e-24 : f32
    %16 = vector.broadcast %cst_6 : f32 to vector<1x8xf32>
    %17 = arith.maximumf %15, %16 : vector<1x8xf32>
    %18 = math.rsqrt %17 : vector<1x8xf32>
    %19 = vector.broadcast %18 : vector<1x8xf32> to vector<32x8xf32>
    %20 = arith.mulf %1, %19 : vector<32x8xf32>
    %cst_7 = arith.constant dense<0.000000e+00> : vector<8x8xf32>
    %21 = tpu.matmul %12, %20, %cst_7 {dimension_numbers = #tpu.dot_dimension_numbers<[1], [0], [0], [1], [0, 0, 1, 1], [], []>} : vector<8x32xf32>, vector<32x8xf32>, vector<8x8xf32> -> vector<8x8xf32>
    %cst_8 = arith.constant dense<0xFF800000> : vector<8xf32>
    %22 = vector.multi_reduction <maximumf>, %21, %cst_8 [1] : vector<8x8xf32> to vector<8xf32>
    %23 = vector.shape_cast %22 : vector<8xf32> to vector<8x1xf32>
    %24 = vector.broadcast %23 : vector<8x1xf32> to vector<8x8xf32>
    %25 = arith.subf %21, %24 : vector<8x8xf32>
    %c0_9 = arith.constant 0 : index
    %c0_10 = arith.constant 0 : index
    %26 = vector.load %arg4[%c0_9, %c0_10] : memref<8x1xi32, #tpu.memory_space<vmem>>, vector<8x1xi32>
    %c0_11 = arith.constant 0 : index
    %c0_12 = arith.constant 0 : index
    %27 = vector.load %arg6[%c0_11, %c0_12] : memref<1x8xi32, #tpu.memory_space<vmem>>, vector<1x8xi32>
    %28 = vector.broadcast %26 : vector<8x1xi32> to vector<8x8xi32>
    %29 = vector.broadcast %27 : vector<1x8xi32> to vector<8x8xi32>
    %30 = arith.cmpi eq, %28, %29 : vector<8x8xi32>
    %31 = arith.extui %30 : vector<8x8xi1> to vector<8x8xi32>
    %32 = arith.sitofp %31 : vector<8x8xi32> to vector<8x8xf32>
    %cst_13 = arith.constant 1.000000e+00 : f32
    %33 = vector.broadcast %cst_13 : f32 to vector<8x8xf32>
    %34 = arith.subf %33, %32 : vector<8x8xf32>
    %35 = math.exp %25 : vector<8x8xf32>
    %36 = arith.mulf %35, %34 : vector<8x8xf32>
    %cst_14 = arith.constant dense<0.000000e+00> : vector<8xf32>
    %37 = vector.multi_reduction <add>, %36, %cst_14 [1] : vector<8x8xf32> to vector<8xf32>
    %38 = vector.shape_cast %37 : vector<8xf32> to vector<8x1xf32>
    %cst_15 = arith.constant 9.99999997E-7 : f32
    %39 = vector.broadcast %cst_15 : f32 to vector<8x1xf32>
    %40 = arith.addf %38, %39 : vector<8x1xf32>
    %41 = math.log %40 : vector<8x1xf32>
    %42 = arith.mulf %32, %25 : vector<8x8xf32>
    %cst_16 = arith.constant dense<0.000000e+00> : vector<8xf32>
    %43 = vector.multi_reduction <add>, %42, %cst_16 [1] : vector<8x8xf32> to vector<8xf32>
    %44 = vector.shape_cast %43 : vector<8xf32> to vector<8x1xf32>
    %cst_17 = arith.constant dense<0.000000e+00> : vector<8xf32>
    %45 = vector.multi_reduction <add>, %32, %cst_17 [1] : vector<8x8xf32> to vector<8xf32>
    %46 = vector.shape_cast %45 : vector<8xf32> to vector<8x1xf32>
    %c0_18 = arith.constant 0 : index
    %c0_19 = arith.constant 0 : index
    %47 = vector.load %arg3[%c0_18, %c0_19] : memref<8x1xf32, #tpu.memory_space<vmem>>, vector<8x1xf32>
    %48 = arith.mulf %41, %46 : vector<8x1xf32>
    %49 = arith.subf %44, %48 : vector<8x1xf32>
    %50 = arith.mulf %47, %49 : vector<8x1xf32>
    %51 = arith.mulf %47, %46 : vector<8x1xf32>
    %cst_20 = arith.constant 9.99999997E-7 : f32
    %52 = vector.broadcast %cst_20 : f32 to vector<8x1xf32>
    %53 = arith.addf %51, %52 : vector<8x1xf32>
    %54 = arith.divf %50, %53 : vector<8x1xf32>
    %c0_21 = arith.constant 0 : index
    %c0_22 = arith.constant 0 : index
    %55 = vector.load %arg7[%c0_21, %c0_22] : memref<8x1xf32, #tpu.memory_space<vmem>>, vector<8x1xf32>
    tpu.vector_store %arg7[%c0_21, %c0_22], %54 {strides = array<i32>} : memref<8x1xf32, #tpu.memory_space<vmem>>, vector<8x1xf32>,
    return
  }
  func.func @transform_0(%arg0: i32) -> i32 {
    %c0_i32 = arith.constant 0 : i32
    %c0_i32_0 = arith.constant 0 : i32
    return %c0_i32 : i32
  }
  func.func @transform_1(%arg0: i32) -> (i32, i32) {
    %c0_i32 = arith.constant 0 : i32
    %c0_i32_0 = arith.constant 0 : i32
    return %arg0, %c0_i32 : i32, i32
  }
  func.func @transform_2(%arg0: i32) -> (i32, i32) {
    %c0_i32 = arith.constant 0 : i32
    %c0_i32_0 = arith.constant 0 : i32
    return %arg0, %c0_i32 : i32, i32
  }
  func.func @transform_3(%arg0: i32) -> (i32, i32) {
    %c0_i32 = arith.constant 0 : i32
    %c0_i32_0 = arith.constant 0 : i32
    return %arg0, %c0_i32 : i32, i32
  }
  func.func @transform_4(%arg0: i32) -> (i32, i32) {
    %c0_i32 = arith.constant 0 : i32
    %c0_i32_0 = arith.constant 0 : i32
    %c0_i32_1 = arith.constant 0 : i32
    return %c0_i32, %c0_i32_0 : i32, i32
  }
  func.func @transform_5(%arg0: i32) -> (i32, i32) {
    %c0_i32 = arith.constant 0 : i32
    %c0_i32_0 = arith.constant 0 : i32
    %c0_i32_1 = arith.constant 0 : i32
    return %c0_i32, %c0_i32_0 : i32, i32
  }
  func.func @transform_6(%arg0: i32) -> (i32, i32) {
    %c0_i32 = arith.constant 0 : i32
    %c0_i32_0 = arith.constant 0 : i32
    return %arg0, %c0_i32 : i32, i32
  }
}

</mosaic_0001>

<bundles_post_ra>
// kernel: tpu_custom_call.1
= control target key start
LH: loop header
LB: loop body
LE: loop exit
PB: predicated region body
PF: predicated region fallthrough
CT: control target
= control target key end

     0   :  { %vm30_vm0 = vcmask 261120   ;;  %vm67_vm1 = vcmask 64512   ;;  %v195_v38 = vmov 0   ;;  %v196_v62 = vmov 0.0   ;;  %s277_s1 = inlined_call_operand.vmem [shape: f32[8,32], index: 1, kind: input, shape index: {}]   ;;  %s278_s4 = inlined_call_operand.vmem [shape: f32[32,8], index: 4, kind: input, shape index: {}]   ;;  %s279_s0 = inlined_call_operand.<no memory space> [shape: f32[1], index: 0, kind: input, shape index: {}]   ;;  %s280_s3 = inlined_call_operand.vmem [shape: s32[8,1], index: 3, kind: input, shape index: {}]   ;;  %s281_s5 = inlined_call_operand.vmem [shape: s32[1,8], index: 5, kind: input, shape index: {}]   ;;  %s282_s2 = inlined_call_operand.vmem [shape: f32[8,1], index: 2, kind: input, shape index: {}]   ;;  %s283_s6 = inlined_call_operand.vmem [shape: f32[8,1], index: 6, kind: output, shape index: {}]  }
   0x1   :  { %v235_v0 = vld [vmem:[%s277_s1] sm:$0xff]  ;;  %v26_v4 = vld [vmem:[%s278_s4 + $0x8] sm:$0xff]  ;;  %v27_v7 = vld [vmem:[%s278_s4 + $0x10] sm:$0xff]  ;;  %v46_v35 = vstv %s279_s0  ;;  %180 = vset.pattern.permute.xlu1 %v195_v38  ;;  %181 = vset.pattern.permute.xlu0 %v195_v38 }
   0x2   :  { %v29_v1 = vmul.f32 %v235_v0, %v235_v0  ;;  %v25_v3 = vld [vmem:[%s278_s4] sm:$0xff]  ;;  %v64_v6 = vmul.f32 %v26_v4, %v26_v4  ;;  %v65_v8 = vmul.f32 %v27_v7, %v27_v7  ;;  %v28_v11 = vld [vmem:[%s278_s4 + $0x18] sm:$0xff]  ;;  %vm52_vm5 = vweird.f32 %v46_v35 }
   0x3   :  { %v63_v5 = vmul.f32 %v25_v3, %v25_v3  ;;  %v66_v13 = vmul.f32 %v28_v11, %v28_v11  ;;  %v123_v37 = vld [vmem:[%s280_s3] sm:$0xff]  ;;  %v58_v47 = vand.u32 2147483648, %v46_v35  ;;  %v56_v49 = vand.u32 2147483647, %v46_v35 }
   0x4   :  { %v31_v2 = vsel %vm30_vm0, %v29_v1, 0.0  ;;  %v69_v10 = vsel %vm67_vm1, %v64_v6, 0.0  ;;  %v71_v14 = vsel %vm67_vm1, %v65_v8, 0.0  ;;  %126 = vperm.xlu1 %180, %v123_v37   ;;  %v182_v60 = vld [vmem:[%s281_s5] ss:$0 sm:$0xff] }
   0x5   :  { %32 = vadd.xlane.f32.xlu0 %v31_v2  ;;  %v68_v9 = vsel %vm67_vm1, %v63_v5, 0.0  ;;  %v73_v16 = vsel %vm67_vm1, %v66_v13, 0.0  ;;  %v59_v52 = vor.u32 1.1754944e-38, %v58_v47  ;;  %vm57_vm8 = vcmp.eq.f32.partialorder %v56_v49, 8.507059e+37  ;;  %v149_v13 = vld [vmem:[%s282_s2] sm:$0xff] }
   0x6   :  { %v70_v12 = vadd.f32 %v69_v10, %v68_v9 }
   0x8   :  { %v72_v15 = vadd.f32 %v71_v14, %v70_v12 }
   0xa   :  { %v74_v17 = vadd.f32 %v73_v16, %v72_v15 }
   0xc   :  { %v75_v18 = vrot.slane %v74_v17, 4 }
   0xe   :  { %v76_v19 = vadd.f32 %v75_v18, %v74_v17 }
  0x10   :  { %v77_v20 = vrot.slane %v76_v19, 2 }
  0x12   :  { %v78_v21 = vadd.f32 %v77_v20, %v76_v19 }
  0x14   :  { %v79_v22 = vrot.slane %v78_v21, 1 }
  0x16   :  { %v80_v23 = vadd.f32 %v79_v22, %v78_v21 }
  0x18   :  { %v81_v24 = vmax.f32 %v80_v23, 1e-24 }
  0x1a   :  { %183 = vrsqrt.f32 %v81_v24  ;;  %vm88_vm2 = vweird.f32 %v81_v24 }
  0x1b   :  { %185 = vrcp.f32 %v46_v35 }
  0x20   :  { %v184_v25 = vpop.eup %183 }
  0x21   :  { %v83_v26 = vmul.f32 %v184_v25, %v81_v24  ;;  %vm89_vm3 = vweird.f32 %v184_v25  ;;  %v186_v39 = vpop.eup %185 }
  0x22   :  { %vm90_vm4 = vmor %vm88_vm2, %vm89_vm3  ;;  %v48_v40 = vmul.f32 %v186_v39, %v46_v35  ;;  %vm53_vm6 = vweird.f32 %v186_v39 }
  0x23   :  { %v84_v27 = vmul.f32 %v184_v25, %v83_v26  ;;  %vm54_vm7 = vmor %vm52_vm5, %vm53_vm6 }
  0x24   :  { %v49_v43 = vsub.f32 1.0, %v48_v40 }
  0x25   :  { %v85_v28 = vmul.f32 0.5, %v84_v27 }
  0x26   :  { %v50_v44 = vmul.f32 %v186_v39, %v49_v43 }
  0x27   :  { %v86_v29 = vsub.f32 1.5, %v85_v28 }
  0x28   :  { %v51_v48 = vadd.f32 %v186_v39, %v50_v44 }
  0x29   :  { %v87_v30 = vmul.f32 %v184_v25, %v86_v29 }
  0x2a   :  { %v55_v53 = vsel %vm54_vm7, %v186_v39, %v51_v48 }
  0x2b   :  { %v91_v31 = vsel %vm90_vm4, %v184_v25, %v87_v30  ;;  %v60_v56 = vsel %vm57_vm8, %v59_v52, %v55_v53 }
  0x2c   :  { %v95_v32 = vmul.f32 %v91_v31, %v28_v11  ;;  %v94_v33 = vmul.f32 %v91_v31, %v27_v7  ;;  %v93_v34 = vmul.f32 %v91_v31, %v26_v4  ;;  %v92_v36 = vmul.f32 %v91_v31, %v25_v3 }
  0x2e   :  { %111 = vmatpush.msra.mxu0 %v95_v32 }
  0x30   :  { %112 = vmatpush.msra.mxu0 %v94_v33 }
  0x32   :  { %113 = vmatpush.msra.mxu0 %v93_v34 }
  0x34   :  { %114 = vmatpush.msra.mxu0 %v92_v36 }
  0x76   :  { %v127_v61 = vpop.permute.xlu1 %126 }
  0x77   :  { %vm129_vm12 = vcmp.eq.s32.totalorder %v127_v61, %v182_v60 }
  0x78   :  { %v33_v41 = vpop.xlane.xlu0 %32  ;;  %v177_v63 = vsel %vm129_vm12, 1.0, %v196_v62 }
  0x79   :  { %v34_v42 = vmax.f32 %v33_v41, 1e-24  ;;  %v146_v1 = vsel %vm67_vm1, %v177_v63, 0.0  ;;  %v132_v6 = vsub.f32 1.0, %v177_v63 }
  0x7a   :  { %147 = vadd.xlane.f32.xlu1 %v146_v1 }
  0x7b   :  { %187 = vrsqrt.f32 %v34_v42  ;;  %vm41_vm10 = vweird.f32 %v34_v42 }
  0x81   :  { %v188_v45 = vpop.eup %187 }
  0x82   :  { %v36_v46 = vmul.f32 %v188_v45, %v34_v42  ;;  %vm42_vm9 = vweird.f32 %v188_v45 }
  0x83   :  { %vm43_vm11 = vmor %vm41_vm10, %vm42_vm9 }
  0x84   :  { %v37_v50 = vmul.f32 %v188_v45, %v36_v46 }
  0x86   :  { %v38_v51 = vmul.f32 0.5, %v37_v50 }
  0x88   :  { %v39_v54 = vsub.f32 1.5, %v38_v51 }
  0x8a   :  { %v40_v55 = vmul.f32 %v188_v45, %v39_v54 }
  0x8c   :  { %v44_v57 = vsel %vm43_vm11, %v188_v45, %v40_v55 }
  0x8d   :  { %v61_v58 = vmul.f32 %v60_v56, %v44_v57 }
  0x8f   :  { %v62_v59 = vmul.f32 %v61_v58, %v235_v0 }
  0x91   :  { %176 = vmatmul.msk.f32.vlgmr.msra.gmra.mxu0 %vm30_vm0, %v62_v59 }
  0xed   :  { %v148_v12 = vpop.xlane.xlu1 %147 }
  0xee   :  { %v153_v14 = vmul.f32 %v149_v13, %v148_v12 }
  0xf0   :  { %v154_v15 = vadd.f32 1e-06, %v153_v14 }
  0xf2   :  { %vm160_vm13 = vweird.f32 %v154_v15  ;;  %v166_v23 = vand.u32 2147483648, %v154_v15  ;;  %v164_v26 = vand.u32 2147483647, %v154_v15 }
  0xf4   :  { %v167_v28 = vor.u32 1.1754944e-38, %v166_v23  ;;  %vm165_vm0 = vcmp.eq.f32.partialorder %v164_v26, 8.507059e+37 }
 0x10e   :  { %v116_v2 = vpop.f32.mrf.mxu0 }
 0x10f   :  { %v119_v3 = vsel %vm67_vm1, %v116_v2, -inf }
 0x110   :  { %120 = vmax.xlane.f32.xlu0 %v119_v3 }
 0x183   :  { %v121_v4 = vpop.xlane.xlu0 %120 }
 0x184   :  { %v122_v5 = vsub.f32 %v116_v2, %v121_v4 }
 0x186   :  { %v133_v0 = vmul.f32 1.442695, %v122_v5  ;;  %v142_v10 = vmul.f32 %v177_v63, %v122_v5 }
 0x188   :  { %189 = vpow2.f32 %v133_v0  ;;  %v143_v11 = vsel %vm67_vm1, %v142_v10, 0.0 }
 0x189   :  { %191 = vrcp.f32 %v154_v15 }
 0x18e   :  { %v190_v7 = vpop.eup %189 }
 0x18f   :  { %v135_v8 = vmul.f32 %v190_v7, %v132_v6  ;;  %v192_v16 = vpop.eup %191 }
 0x190   :  { %v156_v17 = vmul.f32 %v192_v16, %v154_v15  ;;  %vm161_vm14 = vweird.f32 %v192_v16 }
 0x191   :  { %v136_v9 = vsel %vm67_vm1, %v135_v8, 0.0  ;;  %vm162_vm15 = vmor %vm160_vm13, %vm161_vm14  ;;  %vm170_vm1 = vcmask 7168  }
 0x192   :  { %137 = vadd.xlane.f32.xlu2 %v136_v9  ;;  %v157_v20 = vsub.f32 1.0, %v156_v17 }
 0x194   :  { %v158_v21 = vmul.f32 %v192_v16, %v157_v20 }
 0x196   :  { %v159_v25 = vadd.f32 %v192_v16, %v158_v21 }
 0x198   :  { %v163_v30 = vsel %vm162_vm15, %v192_v16, %v159_v25 }
 0x199   :  { %v168_v33 = vsel %vm165_vm0, %v167_v28, %v163_v30 }
 0x19a   :  { %144 = vadd.xlane.f32.xlu2 %v143_v11 }
 0x205   :  { %v138_v18 = vpop.xlane.xlu2 %137 }
 0x206   :  { %v139_v19 = vadd.f32 1e-06, %v138_v18 }
 0x208   :  { %193 = vlog2.f32 %v139_v19 }
 0x20d   :  { %v145_v29 = vpop.xlane.xlu2 %144 }
 0x20e   :  { %v194_v22 = vpop.eup %193 }
 0x20f   :  { %v141_v24 = vmul.f32 0.6931472, %v194_v22 }
 0x211   :  { %v150_v27 = vmul.f32 %v148_v12, %v141_v24 }
 0x213   :  { %v151_v31 = vsub.f32 %v145_v29, %v150_v27 }
 0x215   :  { %v152_v32 = vmul.f32 %v151_v31, %v149_v13 }
 0x217   :  { %v169_v34 = vmul.f32 %v168_v33, %v152_v32 }
 0x219   :  { %171 = vst.msk [vmem:[%s283_s6] sm:$0xff] %vm170_vm1, %v169_v34 }

</bundles_post_ra>
